<compile_context>
chip_gen: v7x
topology: tpu7x:2x2x1
jax: 0.10.0
libtpu: 0.0.40
codegen_flags: <defaults>
</compile_context>

<pallas_src>
import jax
import jax.numpy as jnp
from jax import lax
from jax.experimental import pallas as pl
from jax.experimental.pallas import tpu as pltpu

FPAD = 16      # feature padding: every layer width (<=10) fits in 16 lanes
OUT_W = 8      # narrow output slab; column 0 holds the real output
VROWS = 16     # rows of the stacked bias/gamma/beta tensor (10 used, padded to 16)
EPS = 1e-5

# Row indices inside the stacked per-feature vector tensor.
_B1, _G1, _BE1 = 0, 1, 2
_B2, _G2, _BE2 = 3, 4, 5
_B3, _G3, _BE3 = 6, 7, 8
_B4 = 9


def _mlp_kernel(batch_ref, x_ref, w_ref, v_ref, o_ref):
    """Fused 4-layer MLP forward (ReLU + training-mode BatchNorm1d + sigmoid)."""
    Bp = x_ref.shape[0]
    b = batch_ref[0]                                     # real (un-padded) batch size
    row_ids = lax.broadcasted_iota(jnp.int32, (Bp, 1), 0)
    row_mask = row_ids < b
    bf = b.astype(jnp.float32)
    inv_b = 1.0 / bf
    n_pad = jnp.float32(Bp) - bf                         # number of masked (padded) rows

    def vec(r):
        # One (1, FPAD) row of the stacked bias/gamma/beta tensor (static slice).
        return v_ref[r:r + 1, :]

    def linear_relu(h, layer, bias_row):
        y = jnp.dot(h, w_ref[layer], preferred_element_type=jnp.float32) + vec(bias_row)
        return jnp.maximum(y, 0.0)

    def batch_norm(h, g_row, be_row):
        # PyTorch training-mode BN: batch stats, biased variance, eps=1e-5.
        # Single masked pass for the stats; padded rows contribute exactly
        # mean^2 each to the centered sum-of-squares, which is subtracted.
        hm = jnp.where(row_mask, h, 0.0)
        mean = jnp.sum(hm, axis=0, keepdims=True) * inv_b
        cent = hm - mean
        ssq = jnp.sum(cent * cent, axis=0, keepdims=True)
        var = jnp.maximum((ssq - n_pad * mean * mean) * inv_b, 0.0)
        scale = vec(g_row) * lax.rsqrt(var + EPS)        # fold gamma * rsqrt into one row
        shift = vec(be_row) - mean * scale
        return h * scale + shift                         # single elementwise apply pass

    h = x_ref[...]
    h = batch_norm(linear_relu(h, 0, _B1), _G1, _BE1)    # fc1 + ReLU + b1
    h = batch_norm(linear_relu(h, 1, _B2), _G2, _BE2)    # fc2 + ReLU + b2
    h = batch_norm(linear_relu(h, 2, _B3), _G3, _BE3)    # fc3 + ReLU + b3
    y = jnp.dot(h, w_ref[3], preferred_element_type=jnp.float32) + vec(_B4)  # fc4
    # Sigmoid only on the narrow output slab (column 0 is the real output).
    o_ref[...] = jax.nn.sigmoid(y[:, :OUT_W]).astype(o_ref.dtype)


def _stack_params(params):
    (w1, b1, g1, be1, w2, b2, g2, be2, w3, b3, g3, be3, w4, b4) = params
    w_stack = jnp.zeros((4, FPAD, FPAD), jnp.float32)
    for l, w in enumerate((w1, w2, w3, w4)):
        w_stack = w_stack.at[l, : w.shape[0], : w.shape[1]].set(w)
    v_stack = jnp.zeros((VROWS, FPAD), jnp.float32)
    rows = (_B1, _G1, _BE1, _B2, _G2, _BE2, _B3, _G3, _BE3, _B4)
    vals = (b1, g1, be1, b2, g2, be2, b3, g3, be3, b4)
    for r, v in zip(rows, vals):
        v_stack = v_stack.at[r, : v.shape[0]].set(v)
    return w_stack, v_stack


def network4l_forward(x, params):
    """x: (B, 10) float32. Returns (B, 1) float32 (training-mode BatchNorm)."""
    B, F = x.shape
    Bp = max(8, ((B + 7) // 8) * 8)

    # Pad only to (Bp, 16); no 128-lane HBM materialization of the input.
    xp = jnp.zeros((Bp, FPAD), jnp.float32).at[:B, :F].set(x)
    w_stack, v_stack = _stack_params(params)
    batch_arr = jnp.array([B], jnp.int32)   # scalar-prefetch: no recompile per B

    grid_spec = pltpu.PrefetchScalarGridSpec(
        num_scalar_prefetch=1,
        grid=(1,),
        in_specs=[
            pl.BlockSpec((Bp, FPAD), lambda i, b: (0, 0)),
            pl.BlockSpec((4, FPAD, FPAD), lambda i, b: (0, 0, 0)),
            pl.BlockSpec((VROWS, FPAD), lambda i, b: (0, 0)),
        ],
        out_specs=pl.BlockSpec((Bp, OUT_W), lambda i, b: (0, 0)),
    )

    out = pl.pallas_call(
        _mlp_kernel,
        out_shape=jax.ShapeDtypeStruct((Bp, OUT_W), jnp.float32),
        grid_spec=grid_spec,
        compiler_params=pltpu.CompilerParams(dimension_semantics=("arbitrary",)),
    )(batch_arr, xp, w_stack, v_stack)

    return out[:B, :1]


def init_params(key):
    """Deterministic parameter init matching the PyTorch module's shapes.
    Linear weights are stored as (in, out); BN gamma=1, beta=0."""
    dims = [(10, 10), (10, 8), (8, 4), (4, 1)]
    ks = jax.random.split(key, 2 * len(dims))
    params = []
    for i, (fan_in, fan_out) in enumerate(dims):
        bound = 1.0 / jnp.sqrt(float(fan_in))
        w = jax.random.uniform(ks[2 * i], (fan_in, fan_out), jnp.float32, -bound, bound)
        b = jax.random.uniform(ks[2 * i + 1], (fan_out,), jnp.float32, -bound, bound)
        params.append(w)
        params.append(b)
        if i < 3:  # BN after the first three layers
            params.append(jnp.ones((fan_out,), jnp.float32))   # gamma
            params.append(jnp.zeros((fan_out,), jnp.float32))  # beta
    return tuple(params)


def _reference_forward(x, params):
    (w1, b1, g1, be1, w2, b2, g2, be2, w3, b3, g3, be3, w4, b4) = params

    def bn(h, g, be):
        m = jnp.mean(h, axis=0, keepdims=True)
        v = jnp.mean((h - m) ** 2, axis=0, keepdims=True)
        return g * (h - m) / jnp.sqrt(v + EPS) + be

    h = jnp.maximum(x @ w1 + b1, 0.0)
    h = bn(h, g1, be1)
    h = jnp.maximum(h @ w2 + b2, 0.0)
    h = bn(h, g2, be2)
    h = jnp.maximum(h @ w3 + b3, 0.0)
    h = bn(h, g3, be3)
    return jax.nn.sigmoid(h @ w4 + b4)


if __name__ == "__main__":
    key = jax.random.PRNGKey(0)
    k_param, k_x = jax.random.split(key)

    params = init_params(k_param)

    # Case 1: batch equal to the padded size (no masked rows).
    B = 8
    x = jax.random.normal(k_x, (B, 10), jnp.float32)
    out = jax.block_until_ready(network4l_forward(x, params))
    ref = _reference_forward(x, params)
    assert out.shape == (B, 1)
    assert jnp.allclose(out, ref, atol=1e-4, rtol=1e-4), (out, ref)

    # Case 2: batch smaller than the padded size (exercises the row mask;
    # same padded shapes -> reuses the compiled kernel).
    B2 = 5
    x2 = x[:B2]
    out2 = jax.block_until_ready(network4l_forward(x2, params))
    ref2 = _reference_forward(x2, params)
    assert out2.shape == (B2, 1)
    assert jnp.allclose(out2, ref2, atol=1e-4, rtol=1e-4), (out2, ref2)

    print("KERNEL_OK")
</pallas_src>

<mosaic_0001>
module attributes {stable_mosaic.version = 11 : i64} {
  func.func @_mlp_kernel(%arg0: i32, %arg1: memref<1xi32, #tpu.memory_space<smem>>, %arg2: memref<8x16xf32, #tpu.memory_space<vmem>>, %arg3: memref<4x16x16xf32, #tpu.memory_space<vmem>>, %arg4: memref<16x16xf32, #tpu.memory_space<vmem>>, %arg5: memref<8x8xf32, #tpu.memory_space<vmem>>) attributes {dimension_semantics = [#tpu.dimension_semantics<arbitrary>], iteration_bounds = array<i64: 1>, scalar_prefetch = 1 : i64, scratch_operands = 0 : i64, tpu.core_type = #tpu.core_type<tc>, window_params = [{pipeline_mode = #tpu.pipeline_mode<synchronous>, transform_indices = @transform_0, window_bounds = array<i64: 8, 16>}, {pipeline_mode = #tpu.pipeline_mode<synchronous>, transform_indices = @transform_1, window_bounds = array<i64: 4, 16, 16>}, {pipeline_mode = #tpu.pipeline_mode<synchronous>, transform_indices = @transform_2, window_bounds = array<i64: 16, 16>}, {pipeline_mode = #tpu.pipeline_mode<synchronous>, transform_indices = @transform_3, window_bounds = array<i64: 8, 8>}]} {
    %c0 = arith.constant 0 : index
    %0 = memref.load %arg1[%c0] : memref<1xi32, #tpu.memory_space<smem>>
    %1 = tpu.iota {dimensions = array<i32: 0>} : vector<8x1xi32>
    %2 = vector.broadcast %0 : i32 to vector<8x1xi32>
    %3 = arith.cmpi slt, %1, %2 : vector<8x1xi32>
    %4 = arith.sitofp %0 : i32 to f32
    %cst = arith.constant 1.000000e+00 : f32
    %5 = arith.divf %cst, %4 : f32
    %cst_0 = arith.constant 8.000000e+00 : f32
    %6 = arith.subf %cst_0, %4 : f32
    %c0_1 = arith.constant 0 : index
    %c0_2 = arith.constant 0 : index
    %7 = vector.load %arg2[%c0_1, %c0_2] : memref<8x16xf32, #tpu.memory_space<vmem>>, vector<8x16xf32>
    %c0_3 = arith.constant 0 : index
    %c0_4 = arith.constant 0 : index
    %c0_5 = arith.constant 0 : index
    %8 = vector.load %arg3[%c0_3, %c0_4, %c0_5] : memref<4x16x16xf32, #tpu.memory_space<vmem>>, vector<1x16x16xf32>
    %9 = vector.shape_cast %8 : vector<1x16x16xf32> to vector<16x16xf32>
    %cst_6 = arith.constant dense<0.000000e+00> : vector<8x16xf32>
    %10 = tpu.matmul %7, %9, %cst_6 {dimension_numbers = #tpu.dot_dimension_numbers<[1], [0], [0], [1], [0, 0, 1, 1], [], []>} : vector<8x16xf32>, vector<16x16xf32>, vector<8x16xf32> -> vector<8x16xf32>
    %c0_7 = arith.constant 0 : index
    %c0_8 = arith.constant 0 : index
    %11 = vector.load %arg4[%c0_7, %c0_8] : memref<16x16xf32, #tpu.memory_space<vmem>>, vector<1x16xf32>
    %12 = vector.broadcast %11 : vector<1x16xf32> to vector<8x16xf32>
    %13 = arith.addf %10, %12 : vector<8x16xf32>
    %cst_9 = arith.constant 0.000000e+00 : f32
    %14 = vector.broadcast %cst_9 : f32 to vector<8x16xf32>
    %15 = arith.maximumf %13, %14 : vector<8x16xf32>
    %cst_10 = arith.constant 0.000000e+00 : f32
    %16 = vector.shape_cast %3 : vector<8x1xi1> to vector<8x1xi1>
    %17 = vector.broadcast %16 : vector<8x1xi1> to vector<8x16xi1>
    %18 = vector.broadcast %cst_10 : f32 to vector<8x16xf32>
    %19 = arith.select %17, %15, %18 : vector<8x16xi1>, vector<8x16xf32>
    %cst_11 = arith.constant dense<0.000000e+00> : vector<16xf32>
    %20 = vector.multi_reduction <add>, %19, %cst_11 [0] : vector<8x16xf32> to vector<16xf32>
    %21 = vector.shape_cast %20 : vector<16xf32> to vector<1x16xf32>
    %22 = vector.broadcast %5 : f32 to vector<1x16xf32>
    %23 = arith.mulf %21, %22 : vector<1x16xf32>
    %24 = vector.broadcast %23 : vector<1x16xf32> to vector<8x16xf32>
    %25 = arith.subf %19, %24 : vector<8x16xf32>
    %26 = arith.mulf %25, %25 : vector<8x16xf32>
    %cst_12 = arith.constant dense<0.000000e+00> : vector<16xf32>
    %27 = vector.multi_reduction <add>, %26, %cst_12 [0] : vector<8x16xf32> to vector<16xf32>
    %28 = vector.shape_cast %27 : vector<16xf32> to vector<1x16xf32>
    %29 = vector.broadcast %6 : f32 to vector<1x16xf32>
    %30 = arith.mulf %29, %23 : vector<1x16xf32>
    %31 = arith.mulf %30, %23 : vector<1x16xf32>
    %32 = arith.subf %28, %31 : vector<1x16xf32>
    %33 = vector.broadcast %5 : f32 to vector<1x16xf32>
    %34 = arith.mulf %32, %33 : vector<1x16xf32>
    %cst_13 = arith.constant 0.000000e+00 : f32
    %35 = vector.broadcast %cst_13 : f32 to vector<1x16xf32>
    %36 = arith.maximumf %34, %35 : vector<1x16xf32>
    %c1 = arith.constant 1 : index
    %c0_14 = arith.constant 0 : index
    %37 = vector.load %arg4[%c1, %c0_14] : memref<16x16xf32, #tpu.memory_space<vmem>>, vector<1x16xf32>
    %cst_15 = arith.constant 9.99999974E-6 : f32
    %38 = vector.broadcast %cst_15 : f32 to vector<1x16xf32>
    %39 = arith.addf %36, %38 : vector<1x16xf32>
    %40 = math.rsqrt %39 : vector<1x16xf32>
    %41 = arith.mulf %37, %40 : vector<1x16xf32>
    %c2 = arith.constant 2 : index
    %c0_16 = arith.constant 0 : index
    %42 = vector.load %arg4[%c2, %c0_16] : memref<16x16xf32, #tpu.memory_space<vmem>>, vector<1x16xf32>
    %43 = arith.mulf %23, %41 : vector<1x16xf32>
    %44 = arith.subf %42, %43 : vector<1x16xf32>
    %45 = vector.broadcast %41 : vector<1x16xf32> to vector<8x16xf32>
    %46 = arith.mulf %15, %45 : vector<8x16xf32>
    %47 = vector.broadcast %44 : vector<1x16xf32> to vector<8x16xf32>
    %48 = arith.addf %46, %47 : vector<8x16xf32>
    %c1_17 = arith.constant 1 : index
    %c0_18 = arith.constant 0 : index
    %c0_19 = arith.constant 0 : index
    %49 = vector.load %arg3[%c1_17, %c0_18, %c0_19] : memref<4x16x16xf32, #tpu.memory_space<vmem>>, vector<1x16x16xf32>
    %50 = vector.shape_cast %49 : vector<1x16x16xf32> to vector<16x16xf32>
    %cst_20 = arith.constant dense<0.000000e+00> : vector<8x16xf32>
    %51 = tpu.matmul %48, %50, %cst_20 {dimension_numbers = #tpu.dot_dimension_numbers<[1], [0], [0], [1], [0, 0, 1, 1], [], []>} : vector<8x16xf32>, vector<16x16xf32>, vector<8x16xf32> -> vector<8x16xf32>
    %c3 = arith.constant 3 : index
    %c0_21 = arith.constant 0 : index
    %52 = vector.load %arg4[%c3, %c0_21] : memref<16x16xf32, #tpu.memory_space<vmem>>, vector<1x16xf32>
    %53 = vector.broadcast %52 : vector<1x16xf32> to vector<8x16xf32>
    %54 = arith.addf %51, %53 : vector<8x16xf32>
    %cst_22 = arith.constant 0.000000e+00 : f32
    %55 = vector.broadcast %cst_22 : f32 to vector<8x16xf32>
    %56 = arith.maximumf %54, %55 : vector<8x16xf32>
    %cst_23 = arith.constant 0.000000e+00 : f32
    %57 = vector.shape_cast %3 : vector<8x1xi1> to vector<8x1xi1>
    %58 = vector.broadcast %57 : vector<8x1xi1> to vector<8x16xi1>
    %59 = vector.broadcast %cst_23 : f32 to vector<8x16xf32>
    %60 = arith.select %58, %56, %59 : vector<8x16xi1>, vector<8x16xf32>
    %cst_24 = arith.constant dense<0.000000e+00> : vector<16xf32>
    %61 = vector.multi_reduction <add>, %60, %cst_24 [0] : vector<8x16xf32> to vector<16xf32>
    %62 = vector.shape_cast %61 : vector<16xf32> to vector<1x16xf32>
    %63 = vector.broadcast %5 : f32 to vector<1x16xf32>
    %64 = arith.mulf %62, %63 : vector<1x16xf32>
    %65 = vector.broadcast %64 : vector<1x16xf32> to vector<8x16xf32>
    %66 = arith.subf %60, %65 : vector<8x16xf32>
    %67 = arith.mulf %66, %66 : vector<8x16xf32>
    %cst_25 = arith.constant dense<0.000000e+00> : vector<16xf32>
    %68 = vector.multi_reduction <add>, %67, %cst_25 [0] : vector<8x16xf32> to vector<16xf32>
    %69 = vector.shape_cast %68 : vector<16xf32> to vector<1x16xf32>
    %70 = vector.broadcast %6 : f32 to vector<1x16xf32>
    %71 = arith.mulf %70, %64 : vector<1x16xf32>
    %72 = arith.mulf %71, %64 : vector<1x16xf32>
    %73 = arith.subf %69, %72 : vector<1x16xf32>
    %74 = vector.broadcast %5 : f32 to vector<1x16xf32>
    %75 = arith.mulf %73, %74 : vector<1x16xf32>
    %cst_26 = arith.constant 0.000000e+00 : f32
    %76 = vector.broadcast %cst_26 : f32 to vector<1x16xf32>
    %77 = arith.maximumf %75, %76 : vector<1x16xf32>
    %c4 = arith.constant 4 : index
    %c0_27 = arith.constant 0 : index
    %78 = vector.load %arg4[%c4, %c0_27] : memref<16x16xf32, #tpu.memory_space<vmem>>, vector<1x16xf32>
    %cst_28 = arith.constant 9.99999974E-6 : f32
    %79 = vector.broadcast %cst_28 : f32 to vector<1x16xf32>
    %80 = arith.addf %77, %79 : vector<1x16xf32>
    %81 = math.rsqrt %80 : vector<1x16xf32>
    %82 = arith.mulf %78, %81 : vector<1x16xf32>
    %c5 = arith.constant 5 : index
    %c0_29 = arith.constant 0 : index
    %83 = vector.load %arg4[%c5, %c0_29] : memref<16x16xf32, #tpu.memory_space<vmem>>, vector<1x16xf32>
    %84 = arith.mulf %64, %82 : vector<1x16xf32>
    %85 = arith.subf %83, %84 : vector<1x16xf32>
    %86 = vector.broadcast %82 : vector<1x16xf32> to vector<8x16xf32>
    %87 = arith.mulf %56, %86 : vector<8x16xf32>
    %88 = vector.broadcast %85 : vector<1x16xf32> to vector<8x16xf32>
    %89 = arith.addf %87, %88 : vector<8x16xf32>
    %c2_30 = arith.constant 2 : index
    %c0_31 = arith.constant 0 : index
    %c0_32 = arith.constant 0 : index
    %90 = vector.load %arg3[%c2_30, %c0_31, %c0_32] : memref<4x16x16xf32, #tpu.memory_space<vmem>>, vector<1x16x16xf32>
    %91 = vector.shape_cast %90 : vector<1x16x16xf32> to vector<16x16xf32>
    %cst_33 = arith.constant dense<0.000000e+00> : vector<8x16xf32>
    %92 = tpu.matmul %89, %91, %cst_33 {dimension_numbers = #tpu.dot_dimension_numbers<[1], [0], [0], [1], [0, 0, 1, 1], [], []>} : vector<8x16xf32>, vector<16x16xf32>, vector<8x16xf32> -> vector<8x16xf32>
    %c6 = arith.constant 6 : index
    %c0_34 = arith.constant 0 : index
    %93 = vector.load %arg4[%c6, %c0_34] : memref<16x16xf32, #tpu.memory_space<vmem>>, vector<1x16xf32>
    %94 = vector.broadcast %93 : vector<1x16xf32> to vector<8x16xf32>
    %95 = arith.addf %92, %94 : vector<8x16xf32>
    %cst_35 = arith.constant 0.000000e+00 : f32
    %96 = vector.broadcast %cst_35 : f32 to vector<8x16xf32>
    %97 = arith.maximumf %95, %96 : vector<8x16xf32>
    %cst_36 = arith.constant 0.000000e+00 : f32
    %98 = vector.shape_cast %3 : vector<8x1xi1> to vector<8x1xi1>
    %99 = vector.broadcast %98 : vector<8x1xi1> to vector<8x16xi1>
    %100 = vector.broadcast %cst_36 : f32 to vector<8x16xf32>
    %101 = arith.select %99, %97, %100 : vector<8x16xi1>, vector<8x16xf32>
    %cst_37 = arith.constant dense<0.000000e+00> : vector<16xf32>
    %102 = vector.multi_reduction <add>, %101, %cst_37 [0] : vector<8x16xf32> to vector<16xf32>
    %103 = vector.shape_cast %102 : vector<16xf32> to vector<1x16xf32>
    %104 = vector.broadcast %5 : f32 to vector<1x16xf32>
    %105 = arith.mulf %103, %104 : vector<1x16xf32>
    %106 = vector.broadcast %105 : vector<1x16xf32> to vector<8x16xf32>
    %107 = arith.subf %101, %106 : vector<8x16xf32>
    %108 = arith.mulf %107, %107 : vector<8x16xf32>
    %cst_38 = arith.constant dense<0.000000e+00> : vector<16xf32>
    %109 = vector.multi_reduction <add>, %108, %cst_38 [0] : vector<8x16xf32> to vector<16xf32>
    %110 = vector.shape_cast %109 : vector<16xf32> to vector<1x16xf32>
    %111 = vector.broadcast %6 : f32 to vector<1x16xf32>
    %112 = arith.mulf %111, %105 : vector<1x16xf32>
    %113 = arith.mulf %112, %105 : vector<1x16xf32>
    %114 = arith.subf %110, %113 : vector<1x16xf32>
    %115 = vector.broadcast %5 : f32 to vector<1x16xf32>
    %116 = arith.mulf %114, %115 : vector<1x16xf32>
    %cst_39 = arith.constant 0.000000e+00 : f32
    %117 = vector.broadcast %cst_39 : f32 to vector<1x16xf32>
    %118 = arith.maximumf %116, %117 : vector<1x16xf32>
    %c7 = arith.constant 7 : index
    %c0_40 = arith.constant 0 : index
    %119 = vector.load %arg4[%c7, %c0_40] : memref<16x16xf32, #tpu.memory_space<vmem>>, vector<1x16xf32>
    %cst_41 = arith.constant 9.99999974E-6 : f32
    %120 = vector.broadcast %cst_41 : f32 to vector<1x16xf32>
    %121 = arith.addf %118, %120 : vector<1x16xf32>
    %122 = math.rsqrt %121 : vector<1x16xf32>
    %123 = arith.mulf %119, %122 : vector<1x16xf32>
    %c8 = arith.constant 8 : index
    %c0_42 = arith.constant 0 : index
    %124 = vector.load %arg4[%c8, %c0_42] : memref<16x16xf32, #tpu.memory_space<vmem>>, vector<1x16xf32>
    %125 = arith.mulf %105, %123 : vector<1x16xf32>
    %126 = arith.subf %124, %125 : vector<1x16xf32>
    %127 = vector.broadcast %123 : vector<1x16xf32> to vector<8x16xf32>
    %128 = arith.mulf %97, %127 : vector<8x16xf32>
    %129 = vector.broadcast %126 : vector<1x16xf32> to vector<8x16xf32>
    %130 = arith.addf %128, %129 : vector<8x16xf32>
    %c3_43 = arith.constant 3 : index
    %c0_44 = arith.constant 0 : index
    %c0_45 = arith.constant 0 : index
    %131 = vector.load %arg3[%c3_43, %c0_44, %c0_45] : memref<4x16x16xf32, #tpu.memory_space<vmem>>, vector<1x16x16xf32>
    %132 = vector.shape_cast %131 : vector<1x16x16xf32> to vector<16x16xf32>
    %cst_46 = arith.constant dense<0.000000e+00> : vector<8x16xf32>
    %133 = tpu.matmul %130, %132, %cst_46 {dimension_numbers = #tpu.dot_dimension_numbers<[1], [0], [0], [1], [0, 0, 1, 1], [], []>} : vector<8x16xf32>, vector<16x16xf32>, vector<8x16xf32> -> vector<8x16xf32>
    %c9 = arith.constant 9 : index
    %c0_47 = arith.constant 0 : index
    %134 = vector.load %arg4[%c9, %c0_47] : memref<16x16xf32, #tpu.memory_space<vmem>>, vector<1x16xf32>
    %135 = vector.broadcast %134 : vector<1x16xf32> to vector<8x16xf32>
    %136 = arith.addf %133, %135 : vector<8x16xf32>
    %137 = vector.extract_strided_slice %136 {offsets = [0, 0], sizes = [8, 8], strides = [1, 1]} : vector<8x16xf32> to vector<8x8xf32>
    %138 = arith.negf %137 : vector<8x8xf32>
    %139 = math.exp %138 : vector<8x8xf32>
    %cst_48 = arith.constant 1.000000e+00 : f32
    %140 = vector.broadcast %cst_48 : f32 to vector<8x8xf32>
    %141 = arith.addf %140, %139 : vector<8x8xf32>
    %142 = arith.divf %140, %141 : vector<8x8xf32>
    %c0_49 = arith.constant 0 : index
    %c0_50 = arith.constant 0 : index
    %143 = vector.load %arg5[%c0_49, %c0_50] : memref<8x8xf32, #tpu.memory_space<vmem>>, vector<8x8xf32>
    tpu.vector_store %arg5[%c0_49, %c0_50], %142 {strides = array<i32>} : memref<8x8xf32, #tpu.memory_space<vmem>>, vector<8x8xf32>,
    return
  }
  func.func @transform_0(%arg0: i32, %arg1: memref<1xi32, #tpu.memory_space<smem>>) -> (i32, i32) {
    %c0_i32 = arith.constant 0 : i32
    %c0_i32_0 = arith.constant 0 : i32
    %c0_i32_1 = arith.constant 0 : i32
    return %c0_i32, %c0_i32_0 : i32, i32
  }
  func.func @transform_1(%arg0: i32, %arg1: memref<1xi32, #tpu.memory_space<smem>>) -> (i32, i32, i32) {
    %c0_i32 = arith.constant 0 : i32
    %c0_i32_0 = arith.constant 0 : i32
    %c0_i32_1 = arith.constant 0 : i32
    %c0_i32_2 = arith.constant 0 : i32
    return %c0_i32, %c0_i32_0, %c0_i32_1 : i32, i32, i32
  }
  func.func @transform_2(%arg0: i32, %arg1: memref<1xi32, #tpu.memory_space<smem>>) -> (i32, i32) {
    %c0_i32 = arith.constant 0 : i32
    %c0_i32_0 = arith.constant 0 : i32
    %c0_i32_1 = arith.constant 0 : i32
    return %c0_i32, %c0_i32_0 : i32, i32
  }
  func.func @transform_3(%arg0: i32, %arg1: memref<1xi32, #tpu.memory_space<smem>>) -> (i32, i32) {
    %c0_i32 = arith.constant 0 : i32
    %c0_i32_0 = arith.constant 0 : i32
    %c0_i32_1 = arith.constant 0 : i32
    return %c0_i32, %c0_i32_0 : i32, i32
  }
}

</mosaic_0001>

<bundles_post_ra>
// kernel: tpu_custom_call.1
= control target key start
LH: loop header
LB: loop body
LE: loop exit
PB: predicated region body
PF: predicated region fallthrough
CT: control target
= control target key end

     0   :  { %10 = vsyncpa [#allocation5], 0  ;;  %s871_s0 = inlined_call_operand.<no memory space> [shape: s32[1], index: 0, kind: input, shape index: {}]   ;;  %s872_s1 = inlined_call_operand.hbm [shape: f32[8,16], index: 1, kind: input, shape index: {}]   ;;  %s873_s2 = inlined_call_operand.hbm [shape: f32[4,16,16], index: 2, kind: input, shape index: {}]   ;;  %s874_s3 = inlined_call_operand.hbm [shape: f32[16,16], index: 3, kind: input, shape index: {}]   ;;  %s875_s4 = inlined_call_operand.hbm [shape: f32[8,8], index: 4, kind: output, shape index: {}]  }
   0x1   :  { %11 = vsyncpa [#allocation8], 0 }
   0x2   :  { %12 = vsyncpa [#allocation6], 0  ;;  %s720_s15 = smov [#allocation7]   ;;  %s626_s19 = scalar_lea.hbm %s873_s2, 1024 }
   0x3   :  { %s28_s16 = sshll.u32 %s720_s15, 4  ;;  %p627_p0 = scmp.ne.s32.totalorder %s873_s2, %s626_s19  ;;  %s29_s16 = int_to_ptr.vmem [resolvable:$true] %s28_s16 }
   0x4   :  { %p630_p1 = scmp.lt.u32.totalorder %s626_s19, %s873_s2 }
   0x6   :  { %p632_p2 = pnand %p630_p1, %p627_p0 }
   0x8   :  { %635 = shalt.err (!%p632_p2)
}
   0x9   :  { %s636_s24 = scalar_lea.vmem %s29_s16, 1024  ;;  %p641_p4 = scmp.lt.s32.totalorder %s29_s16, %s29_s16 }
   0xa   :  { %p637_p3 = scmp.ne.s32.totalorder %s29_s16, %s636_s24  ;;  %p642_p5 = scmp.lt.s32.totalorder %s636_s24, %s636_s24 }
   0xc   :  { %p643_p6 = por %p642_p5, %p641_p4 }
   0xe   :  { %p644_p7 = pnand %p643_p6, %p637_p3 }
  0x10   :  { %647 = shalt.err (!%p644_p7)
}
  0x11   :  { %s721_s25 = smov 128   ;;  %s722_s26 = smov 8  }
  0x12   :  { %34 = dma.hbm_to_vmem [thread:$0]  %s873_s2, 1024, %s29_s16, [#allocation8], %s721_s25, %s721_s25, %s722_s26  }
  0x13   :  { %s723_s29 = smov [#allocation4]   ;;  %s724_s5 = smov [#allocation9]  }
  0x14   :  { %s19_s30 = sshll.u32 %s723_s29, 4  ;;  %s40_s6 = sshll.u32 %s724_s5, 4  ;;  %s20_s30 = int_to_ptr.vmem [resolvable:$true] %s19_s30  ;;  %s41_s6 = int_to_ptr.vmem [resolvable:$true] %s40_s6 }
  0x15   :  { %s648_s9 = scalar_lea.hbm %s872_s1, 128 }
  0x16   :  { %p649_p8 = scmp.ne.s32.totalorder %s872_s1, %s648_s9  ;;  %p652_p9 = scmp.lt.u32.totalorder %s648_s9, %s872_s1 }
  0x18   :  { %p654_p10 = pnand %p652_p9, %p649_p8 }
  0x1a   :  { %657 = shalt.err (!%p654_p10)
}
  0x1b   :  { %s658_s2 = scalar_lea.vmem %s20_s30, 128  ;;  %p663_p12 = scmp.lt.s32.totalorder %s20_s30, %s20_s30 }
  0x1c   :  { %p659_p11 = scmp.ne.s32.totalorder %s20_s30, %s658_s2  ;;  %p664_p13 = scmp.lt.s32.totalorder %s658_s2, %s658_s2 }
  0x1e   :  { %p665_p0 = por %p664_p13, %p663_p12 }
  0x20   :  { %p666_p1 = pnand %p665_p0, %p659_p11 }
  0x22   :  { %669 = shalt.err (!%p666_p1)
}
  0x23   :  { %22 = dma.hbm_to_vmem [thread:$0]  %s872_s1, 128, %s20_s30, [#allocation5]  }
  0x24   :  { %s670_s18 = scalar_lea.hbm %s874_s3, 256 }
  0x25   :  { %p671_p2 = scmp.ne.s32.totalorder %s874_s3, %s670_s18  ;;  %p674_p3 = scmp.lt.u32.totalorder %s670_s18, %s874_s3 }
  0x27   :  { %p676_p4 = pnand %p674_p3, %p671_p2 }
  0x29   :  { %679 = shalt.err (!%p676_p4)
}
  0x2a   :  { %s680_s23 = scalar_lea.vmem %s41_s6, 256  ;;  %p685_p6 = scmp.lt.s32.totalorder %s41_s6, %s41_s6 }
  0x2b   :  { %p681_p5 = scmp.ne.s32.totalorder %s41_s6, %s680_s23  ;;  %p686_p7 = scmp.lt.s32.totalorder %s680_s23, %s680_s23 }
  0x2d   :  { %p687_p8 = por %p686_p7, %p685_p6 }
  0x2f   :  { %p688_p9 = pnand %p687_p8, %p681_p5 }
  0x31   :  { %691 = shalt.err (!%p688_p9)
}
  0x32   :  { %46 = dma.hbm_to_vmem [thread:$0]  %s874_s3, 256, %s41_s6, [#allocation8], %s721_s25, %s721_s25, %s722_s26  }
  0x33   :  { %714 = dma.done.wait [#allocation5], 128  }
  0x34   :  { %715 = vsyncadd [#allocation5], 4294967168 }
  0x35   :  { %716 = dma.done.wait [#allocation8], 1280  }
  0x36   :  { %717 = vsyncadd [#allocation8], 4294966016  ;;  %s61_s29 = scvt.s32.f32 %s871_s0  ;;  %v725_v0 = vmov 0.0|0.0   ;;  %vm726_vm0 = vmmov 0   ;;  %v727_v1 = vmov 0.0   ;;  %v67_v3 = vld [vmem:[#allocation7] sm:$0xff]  ;;  %v57_v11 = vlaneseq }
  0x37   :  { %591 = vmatprep.subr.bf16.mxu0 %v725_v0  ;;  %567 = vmatprep.mubr.msk.f32.mxu0 %vm726_vm0, %v727_v1  ;;  %v68_v4 = vld [vmem:[#allocation7 + $0x8] sm:$0xff]  ;;  %v66_v6 = vld [vmem:[#allocation4] sm:$0xff]  ;;  %vm74_vm1 = vcmask 130048   ;;  %v194_v8 = vld [vmem:[#allocation7 + $0x10] sm:$0xff]  ;;  %v59_v14 = vstv %s871_s0  ;;  %s728_s0 = smov [#allocation10]   ;;  %vm524_vm3 = vcmask 64512  }
  0x38   :  { %v62_v2 = vstv %s61_s29  ;;  %594 = vmatprep.subr.bf16.mxu1 %v725_v0  ;;  %574 = vmatprep.mubr.msk.f32.mxu1 %vm726_vm0, %v727_v1  ;;  %v592_v5 = vpack.c.bf16 %v68_v4, %v67_v3  ;;  %v195_v9 = vld [vmem:[#allocation7 + $0x18] sm:$0xff]  ;;  %v58_v12 = vshrl.u32 %v57_v11, 7  ;;  %v542_v13 = vld [vmem:[#allocation9] ss:$0 sm:$0xff]  ;;  %s65_s8 = ssub.f32 8.0, %s61_s29  ;;  %v317_v58 = vld [vmem:[#allocation7 + $0x28] sm:$0xff] }
  0x39   :  { %614 = vrcp.f32 %v62_v2  ;;  %v595_v10 = vpack.c.bf16 %v195_v9, %v194_v8  ;;  %v176_v46 = vld [vmem:[#allocation9 + $0x1] sm:$0x1]  ;;  %v180_v50 = vld [vmem:[#allocation9 + $0x2] sm:$0x1]  ;;  %v544_v60 = vld [vmem:[#allocation9 + $0x3] ss:$0 sm:$0xff] }
  0x3a   :  { %593 = vmatpush3.bf16.msra.mxu0 %v592_v5  ;;  %vm813_vm2 = vcmp.lt.s32.totalorder %v58_v12, %v59_v14  ;;  %v828_v35 = vstv %s65_s8  ;;  %v832_v47 = vsub.s32 0, %v58_v12  ;;  %v316_v57 = vld [vmem:[#allocation7 + $0x20] sm:$0xff]  ;;  %s532_s9 = sshll.u32 %s728_s0, 4  ;;  %s533_s9 = int_to_ptr.vmem [resolvable:$true] %s532_s9 }
  0x3b   :  { %597 = vmatprep.subr.bf16.mxu0 %v725_v0  ;;  %596 = vmatpush3.bf16.msra.mxu1 %v595_v10  ;;  %v598_v59 = vpack.c.bf16 %v317_v58, %v316_v57  ;;  %s692_s10 = scalar_lea.vmem %s533_s9, 128  ;;  %p697_p11 = scmp.lt.s32.totalorder %s533_s9, %s533_s9 }
  0x3c   :  { %600 = vmatprep.subr.bf16.mxu1 %v725_v0  ;;  %p693_p10 = scmp.ne.s32.totalorder %s533_s9, %s692_s10  ;;  %p698_p12 = scmp.lt.s32.totalorder %s692_s10, %s692_s10 }
  0x3d   :  { %568 = vmatmul.mubr.msk.f32.vlgmr.msra.gmra.mrb[0].mxu0 %vm74_vm1, %v66_v6 }
  0x3e   :  { %581 = vmatprep.mubr.msk.f32.mxu0 %vm726_vm0, %v727_v1  ;;  %599 = vmatpush3.bf16.msra.mxu0 %v598_v59  ;;  %p699_p13 = por %p698_p12, %p697_p11 }
  0x40   :  { %p700_p0 = pnand %p699_p13, %p693_p10 }
  0x43   :  { %v615_v7 = vpop.eup %614 }
  0x44   :  { %603 = vpush %v615_v7 }
  0x75   :  { %s604_s26 = spop %603 }
  0x76   :  { %v820_v27 = vstv %s604_s26 }
 0x110   :  { %v144_v15 = vpop.f32.mrb[0].mxu0 }
 0x111   :  { %v145_v16 = vadd.f32 %v542_v13, %v144_v15  ;;  %v569_v17 = vpop.f32.mrb[1].mxu0 }
 0x113   :  { %v148_v19 = vmax.f32 %v145_v16, 0.0 }
 0x115   :  { %v151_v20 = vsel %vm813_vm2, %v148_v19, 0.0 }
 0x116   :  { %v152_v21 = vsel %vm74_vm1, %v151_v20, 0.0 }
 0x117   :  { %v153_v22 = vrot.slane %v152_v21, 4 }
 0x119   :  { %v154_v23 = vadd.f32 %v153_v22, %v152_v21 }
 0x11b   :  { %v155_v24 = vrot.slane %v154_v23, 2 }
 0x11d   :  { %v156_v25 = vadd.f32 %v155_v24, %v154_v23 }
 0x11f   :  { %v157_v26 = vrot.slane %v156_v25, 1 }
 0x121   :  { %v158_v28 = vadd.f32 %v157_v26, %v156_v25  ;;  %v298_v26 = vld [vmem:[#allocation9 + $0x4] sm:$0x1] }
 0x123   :  { %v160_v29 = vmul.f32 %v820_v27, %v158_v28 }
 0x125   :  { %v161_v30 = vsub.f32 %v151_v20, %v160_v29  ;;  %v171_v38 = vmul.f32 %v828_v35, %v160_v29 }
 0x127   :  { %v162_v31 = vmul.f32 %v161_v30, %v161_v30  ;;  %v172_v41 = vmul.f32 %v171_v38, %v160_v29  ;;  %v302_v30 = vld [vmem:[#allocation9 + $0x5] sm:$0x1]  ;;  %v438_v38 = vld [vmem:[#allocation7 + $0x30] sm:$0xff] }
 0x129   :  { %v163_v32 = vsel %vm74_vm1, %v162_v31, 0.0 }
 0x12a   :  { %v164_v33 = vrot.slane %v163_v32, 4 }
 0x12c   :  { %v165_v34 = vadd.f32 %v164_v33, %v163_v32 }
 0x12e   :  { %v166_v36 = vrot.slane %v165_v34, 2 }
 0x130   :  { %v167_v37 = vadd.f32 %v166_v36, %v165_v34 }
 0x132   :  { %v168_v39 = vrot.slane %v167_v37, 1 }
 0x134   :  { %v169_v40 = vadd.f32 %v168_v39, %v167_v37  ;;  %v439_v39 = vld [vmem:[#allocation7 + $0x38] sm:$0xff] }
 0x136   :  { %v173_v42 = vsub.f32 %v169_v40, %v172_v41  ;;  %v601_v40 = vpack.c.bf16 %v439_v39, %v438_v38  ;;  %v546_v41 = vld [vmem:[#allocation9 + $0x6] ss:$0 sm:$0xff] }
 0x138   :  { %v174_v43 = vmul.f32 %v173_v42, %v820_v27 }
 0x13a   :  { %v175_v44 = vmax.f32 %v174_v43, 0.0 }
 0x13c   :  { %v177_v45 = vadd.f32 1e-05, %v175_v44 }
 0x13e   :  { %616 = vrsqrt.f32 %v177_v45 }
 0x148   :  { %v617_v48 = vpop.eup %616 }
 0x149   :  { %v179_v49 = vmul.f32 %v617_v48, %v176_v46 }
 0x14b   :  { %v181_v51 = vmul.f32 %v179_v49, %v160_v29  ;;  %v186_v52 = vrot.slane %v179_v49, %v832_v47 }
 0x14d   :  { %v182_v53 = vsub.f32 %v180_v50, %v181_v51  ;;  %v187_v54 = vmul.f32 %v186_v52, %v148_v19 }
 0x14f   :  { %v191_v55 = vrot.slane %v182_v53, %v832_v47 }
 0x151   :  { %v192_v56 = vadd.f32 %v191_v55, %v187_v54 }
 0x153   :  { %575 = vmatmul.mubr.msk.f32.vlgmr.msra.gmra.mrb[0].mxu1 %vm74_vm1, %v192_v56 }
 0x154   :  { %588 = vmatprep.mubr.msk.f32.mxu1 %vm726_vm0, %v727_v1  ;;  %602 = vmatpush3.bf16.msra.mxu1 %v601_v40 }
 0x226   :  { %v270_v61 = vpop.f32.mrb[0].mxu1 }
 0x227   :  { %v271_v62 = vadd.f32 %v544_v60, %v270_v61  ;;  %v576_v63 = vpop.f32.mrb[1].mxu1 }
 0x229   :  { %v274_v0 = vmax.f32 %v271_v62, 0.0 }
 0x22b   :  { %v275_v2 = vsel %vm813_vm2, %v274_v0, 0.0 }
 0x22c   :  { %v276_v3 = vsel %vm74_vm1, %v275_v2, 0.0 }
 0x22d   :  { %v277_v4 = vrot.slane %v276_v3, 4 }
 0x22f   :  { %v278_v5 = vadd.f32 %v277_v4, %v276_v3 }
 0x231   :  { %v279_v6 = vrot.slane %v278_v5, 2 }
 0x233   :  { %v280_v7 = vadd.f32 %v279_v6, %v278_v5 }
 0x235   :  { %v281_v8 = vrot.slane %v280_v7, 1 }
 0x237   :  { %v282_v1 = vadd.f32 %v281_v8, %v280_v7  ;;  %v420_v7 = vld [vmem:[#allocation9 + $0x7] sm:$0x1] }
 0x239   :  { %v283_v9 = vmul.f32 %v282_v1, %v820_v27 }
 0x23b   :  { %v284_v10 = vsub.f32 %v275_v2, %v283_v9  ;;  %v293_v17 = vmul.f32 %v283_v9, %v828_v35 }
 0x23d   :  { %v285_v11 = vmul.f32 %v284_v10, %v284_v10  ;;  %v294_v21 = vmul.f32 %v293_v17, %v283_v9 }
 0x23f   :  { %v286_v12 = vsel %vm74_vm1, %v285_v11, 0.0 }
 0x240   :  { %v287_v13 = vrot.slane %v286_v12, 4 }
 0x242   :  { %v288_v14 = vadd.f32 %v287_v13, %v286_v12 }
 0x244   :  { %v289_v15 = vrot.slane %v288_v14, 2 }
 0x246   :  { %v290_v16 = vadd.f32 %v289_v15, %v288_v14  ;;  %v548_v15 = vld [vmem:[#allocation9 + $0x9] ss:$0 sm:$0xff] }
 0x248   :  { %v291_v19 = vrot.slane %v290_v16, 1 }
 0x24a   :  { %v292_v20 = vadd.f32 %v291_v19, %v290_v16 }
 0x24c   :  { %v295_v22 = vsub.f32 %v292_v20, %v294_v21 }
 0x24e   :  { %v296_v23 = vmul.f32 %v295_v22, %v820_v27 }
 0x250   :  { %v297_v24 = vmax.f32 %v296_v23, 0.0 }
 0x252   :  { %v299_v25 = vadd.f32 1e-05, %v297_v24 }
 0x254   :  { %618 = vrsqrt.f32 %v299_v25 }
 0x25e   :  { %v619_v28 = vpop.eup %618 }
 0x25f   :  { %v301_v29 = vmul.f32 %v619_v28, %v298_v26 }
 0x261   :  { %v303_v31 = vmul.f32 %v301_v29, %v283_v9  ;;  %v308_v32 = vrot.slane %v301_v29, %v832_v47  ;;  %v424_v9 = vld [vmem:[#allocation9 + $0x8] sm:$0x1] }
 0x263   :  { %v304_v33 = vsub.f32 %v302_v30, %v303_v31  ;;  %v309_v34 = vmul.f32 %v308_v32, %v274_v0 }
 0x265   :  { %v313_v36 = vrot.slane %v304_v33, %v832_v47 }
 0x267   :  { %v314_v37 = vadd.f32 %v313_v36, %v309_v34 }
 0x269   :  { %582 = vmatmul.mubr.msk.f32.vlgmr.msra.gmra.mrb[2].mxu0 %vm74_vm1, %v314_v37 }
 0x33c   :  { %v392_v42 = vpop.f32.mrb[2].mxu0 }
 0x33d   :  { %v393_v43 = vadd.f32 %v546_v41, %v392_v42  ;;  %v583_v44 = vpop.f32.mrb[3].mxu0 }
 0x33f   :  { %v396_v45 = vmax.f32 %v393_v43, 0.0 }
 0x341   :  { %v397_v46 = vsel %vm813_vm2, %v396_v45, 0.0 }
 0x342   :  { %v398_v48 = vsel %vm74_vm1, %v397_v46, 0.0 }
 0x343   :  { %v399_v49 = vrot.slane %v398_v48, 4 }
 0x345   :  { %v400_v50 = vadd.f32 %v399_v49, %v398_v48 }
 0x347   :  { %v401_v51 = vrot.slane %v400_v50, 2 }
 0x349   :  { %v402_v52 = vadd.f32 %v401_v51, %v400_v50 }
 0x34b   :  { %v403_v53 = vrot.slane %v402_v52, 1 }
 0x34d   :  { %v404_v54 = vadd.f32 %v403_v53, %v402_v52 }
 0x34f   :  { %v405_v55 = vmul.f32 %v404_v54, %v820_v27 }
 0x351   :  { %v406_v56 = vsub.f32 %v397_v46, %v405_v55  ;;  %v415_v18 = vmul.f32 %v405_v55, %v828_v35 }
 0x353   :  { %v407_v57 = vmul.f32 %v406_v56, %v406_v56  ;;  %v416_v2 = vmul.f32 %v415_v18, %v405_v55 }
 0x355   :  { %v408_v58 = vsel %vm74_vm1, %v407_v57, 0.0 }
 0x356   :  { %v409_v59 = vrot.slane %v408_v58, 4 }
 0x358   :  { %v410_v60 = vadd.f32 %v409_v59, %v408_v58 }
 0x35a   :  { %v411_v61 = vrot.slane %v410_v60, 2 }
 0x35c   :  { %v412_v62 = vadd.f32 %v411_v61, %v410_v60 }
 0x35e   :  { %v413_v63 = vrot.slane %v412_v62, 1 }
 0x360   :  { %v414_v0 = vadd.f32 %v413_v63, %v412_v62 }
 0x362   :  { %v417_v3 = vsub.f32 %v414_v0, %v416_v2 }
 0x364   :  { %v418_v4 = vmul.f32 %v417_v3, %v820_v27 }
 0x366   :  { %v419_v5 = vmax.f32 %v418_v4, 0.0 }
 0x368   :  { %v421_v6 = vadd.f32 1e-05, %v419_v5 }
 0x36a   :  { %620 = vrsqrt.f32 %v421_v6 }
 0x374   :  { %v621_v8 = vpop.eup %620 }
 0x375   :  { %v423_v1 = vmul.f32 %v621_v8, %v420_v7 }
 0x377   :  { %v425_v10 = vmul.f32 %v423_v1, %v405_v55  ;;  %v430_v11 = vrot.slane %v423_v1, %v832_v47 }
 0x379   :  { %v426_v12 = vsub.f32 %v424_v9, %v425_v10  ;;  %v431_v13 = vmul.f32 %v430_v11, %v396_v45 }
 0x37b   :  { %v435_v35 = vrot.slane %v426_v12, %v832_v47 }
 0x37d   :  { %v436_v14 = vadd.f32 %v435_v35, %v431_v13 }
 0x37f   :  { %589 = vmatmul.mubr.msk.f32.vlgmr.msra.gmra.mrb[2].mxu1 %vm74_vm1, %v436_v14 }
 0x452   :  { %v514_v16 = vpop.f32.mrb[2].mxu1 }
 0x453   :  { %v515_v27 = vadd.f32 %v548_v15, %v514_v16  ;;  %v590_v17 = vpop.f32.mrb[3].mxu1 }
 0x455   :  { %v550_v19 = vmul.f32 -1.442695, %v515_v27 }
 0x457   :  { %622 = vpow2.f32 %v550_v19 }
 0x461   :  { %v623_v20 = vpop.eup %622 }
 0x462   :  { %v521_v21 = vadd.f32 1.0, %v623_v20 }
 0x464   :  { %624 = vrcp.f32 %v521_v21 }
 0x46e   :  { %v625_v22 = vpop.eup %624 }
 0x46f   :  { %525 = vst.msk [vmem:[#allocation10] sm:$0xff] %vm524_vm3, %v625_v22 }
 0x470   :  { %703 = shalt.err (!%p700_p0)
}
 0x471   :  { %s704_s13 = scalar_lea.hbm %s875_s4, 128 }
 0x472   :  { %p705_p1 = scmp.ne.s32.totalorder %s875_s4, %s704_s13  ;;  %p708_p2 = scmp.lt.u32.totalorder %s704_s13, %s875_s4 }
 0x474   :  { %p710_p3 = pnand %p708_p2, %p705_p1 }
 0x476   :  { %713 = shalt.err (!%p710_p3)
}
 0x477   :  { %535 = dma.vmem_to_hbm [thread:$0]  %s533_s9, 128, %s875_s4, [#allocation6]  }
 0x478   :  { %718 = dma.done.wait [#allocation6], 128  }
 0x479   :  { %719 = vsyncadd [#allocation6], 4294967168 }
 0x47a   :  { %539 = vsyncpa [#allocation5], 1 }
 0x47b   :  { %540 = vsyncpa [#allocation8], 1 }
 0x47c   :  { %541 = vsyncpa [#allocation6], 1 }

</bundles_post_ra>
